<compile_context>
chip_gen: v7x
topology: tpu7x:2x2x1
jax: 0.10.0
libtpu: 0.0.40
codegen_flags: <defaults>
</compile_context>

<pallas_src>
import functools

import jax
import jax.numpy as jnp
from jax.experimental import pallas as pl
from jax.experimental.pallas import tpu as pltpu

# ---- model dimensions (small, forward-consistent) ---------------------------
N_ITEMS = 128          # p_dims[-1] == q_dims[0]  (lane width of every tile)
HIDDEN = 64            # middle dim
LATENT = 32            # p_dims[0] == q_dims[-1]
P_DIMS = [LATENT, HIDDEN, N_ITEMS]
Q_DIMS = P_DIMS[::-1]                         # [128, 64, 32]
TEMP_Q_DIMS = Q_DIMS[:-1] + [Q_DIMS[-1] * 2]  # [128, 64, 64]

B = 2                  # batch of user rows
T = 4                  # number of problem_tag rows (tag_emb)
EPS = 1e-12            # F.normalize eps

# fused layer-2 output lane layout: [ mu | logvar | decoder pre-activation ]
FUSED_W = 2 * LATENT + HIDDEN
assert FUSED_W == N_ITEMS, "packing assumes 2*LATENT + HIDDEN == N_ITEMS (=128)"

SLAB_ROWS = 3 * N_ITEMS + 8   # 3 square weight blocks + 8 bias rows (sublane-aligned)
_BIAS_BASE = 3 * N_ITEMS


# ---- kernel ------------------------------------------------------------------
def _multivae_kernel(tag_ref, x_ref, slab_ref, out_ref, h_scratch,
                     *, n_tag, n_user):
    """Fused MultiVAE forward (eval mode) on one sublane-padded activation tile.

    out_ref lanes [0:128]   = h2 = [mu | logvar | d_pre]   (fused layer-2 output)
    out_ref lanes [128:256] = decoder output
    """
    # Assemble the padded [rows_pad, 128] activation tile in VMEM scratch:
    #   rows [0:n_tag]              = problem_tag rows (no normalization)
    #   rows [n_tag:n_tag+n_user]   = L2-normalized user rows
    #   remaining rows              = 0 (padding; sliced off wrapper-side)
    h_scratch[...] = jnp.zeros_like(h_scratch)
    h_scratch[0:n_tag, :] = tag_ref[...]

    x = x_ref[...]                                        # [n_user, N_ITEMS]
    # F.normalize(x, dim=1): x / max(||x||_2, eps) == x * rsqrt(max(sum(x^2), eps^2))
    sumsq = jnp.sum(x * x, axis=1, keepdims=True)         # [n_user, 1]
    inv = jax.lax.rsqrt(jnp.maximum(sumsq, EPS * EPS))    # EUP rsqrt, no divide
    h_scratch[n_tag:n_tag + n_user, :] = x * inv
    # dropout is identity in eval mode

    h = h_scratch[...]                                    # [rows_pad, N_ITEMS]

    # static views into the packed parameter slab (tile-aligned row slices)
    w1 = slab_ref[0:N_ITEMS, :]                 # q layer 0 weight (lanes >= HIDDEN zero)
    w2 = slab_ref[N_ITEMS:2 * N_ITEMS, :]       # fused [q layer 1 | q1->p0] weight
    w3 = slab_ref[2 * N_ITEMS:3 * N_ITEMS, :]   # p layer 1 weight (mu/logvar rows zero)
    b1 = slab_ref[_BIAS_BASE + 0:_BIAS_BASE + 1, :]
    b2 = slab_ref[_BIAS_BASE + 1:_BIAS_BASE + 2, :]
    b3 = slab_ref[_BIAS_BASE + 2:_BIAS_BASE + 3, :]

    # q layer 0 (tanh); the padded lanes stay exactly 0 (tanh(0 + 0) = 0)
    h1 = jnp.tanh(jnp.dot(h, w1, preferred_element_type=jnp.float32) + b1)

    # fused q layer 1 + decoder layer 0 pre-activation in ONE MXU pass:
    #   lanes [:2*LATENT]  = [mu | logvar]
    #   lanes [2*LATENT:]  = mu @ Wp1.T + bp1   (z = mu in eval mode)
    h2 = jnp.dot(h1, w2, preferred_element_type=jnp.float32) + b2
    out_ref[:, 0:N_ITEMS] = h2                             # lane-aligned full store

    # decoder output: tanh everything; the mu/logvar lanes hit zero rows of w3,
    # so the result is exactly tanh(d_pre) @ Wp2.T + bp2 — no lane slicing needed.
    out_ref[:, N_ITEMS:2 * N_ITEMS] = (
        jnp.dot(jnp.tanh(h2), w3, preferred_element_type=jnp.float32) + b3)


# ---- one-time parameter packing (hoisted out of the per-call path) -----------
def pack_params(params):
    """Transpose to (in,out), fuse q2->p1, zero-pad and stack into one f32 slab."""
    f32 = jnp.float32
    qw1 = params["q_w1"].T.astype(f32)      # [N_ITEMS, HIDDEN]
    qw2 = params["q_w2"].T.astype(f32)      # [HIDDEN, 2*LATENT]
    pw1 = params["p_w1"].T.astype(f32)      # [LATENT, HIDDEN]
    pw2 = params["p_w2"].T.astype(f32)      # [HIDDEN, N_ITEMS]
    qb1 = params["q_b1"].astype(f32)        # [HIDDEN]
    qb2 = params["q_b2"].astype(f32)        # [2*LATENT]
    pb1 = params["p_b1"].astype(f32)        # [HIDDEN]
    pb2 = params["p_b2"].astype(f32)        # [N_ITEMS]

    # Eval-mode fusion of q layer 2 -> p layer 1:
    #   d_pre = mu @ pw1 + pb1 = h1 @ (qw2[:, :L] @ pw1) + (qb2[:L] @ pw1 + pb1)
    hi = jax.lax.Precision.HIGHEST
    w_fused = jnp.dot(qw2[:, :LATENT], pw1, precision=hi)          # [HIDDEN, HIDDEN]
    b_fused = jnp.dot(qb2[:LATENT], pw1, precision=hi) + pb1       # [HIDDEN]

    K = N_ITEMS
    # layer 1 block: output lanes beyond HIDDEN are zero
    w1_blk = jnp.zeros((N_ITEMS, K), f32).at[:, :HIDDEN].set(qw1)
    # fused layer 2 block: rows beyond HIDDEN are zero (they meet h1's zero lanes)
    w2_blk = jnp.zeros((K, K), f32)
    w2_blk = w2_blk.at[:HIDDEN, :2 * LATENT].set(qw2)
    w2_blk = w2_blk.at[:HIDDEN, 2 * LATENT:FUSED_W].set(w_fused)
    # decoder output block: the rows fed by tanh(mu|logvar) are zero
    w3_blk = jnp.zeros((K, K), f32).at[2 * LATENT:FUSED_W, :].set(pw2)

    b_blk = jnp.zeros((8, K), f32)
    b_blk = b_blk.at[0, :HIDDEN].set(qb1)
    b_blk = b_blk.at[1, :2 * LATENT].set(qb2)
    b_blk = b_blk.at[1, 2 * LATENT:FUSED_W].set(b_fused)
    b_blk = b_blk.at[2, :].set(pb2)

    slab = jnp.concatenate([w1_blk, w2_blk, w3_blk, b_blk], axis=0)  # [392, 128]
    assert slab.shape == (SLAB_ROWS, N_ITEMS)
    return slab


# ---- forward wrapper ---------------------------------------------------------
@jax.jit
def multivae_forward(x, problem_tag, slab):
    """x: [B, n_items] f32, problem_tag: [T, n_items] f32, slab: packed params."""
    n_tag, n_items = problem_tag.shape
    n_user = x.shape[0]
    rows = n_tag + n_user
    rows_pad = ((rows + 7) // 8) * 8          # sublane-aligned row count

    vmem = pl.BlockSpec(memory_space=pltpu.MemorySpace.VMEM)
    kernel = functools.partial(_multivae_kernel, n_tag=n_tag, n_user=n_user)

    # single lane-dense output slab: lanes [0:128] = h2, lanes [128:256] = decoder out
    fused_out = pl.pallas_call(
        kernel,
        out_shape=jax.ShapeDtypeStruct((rows_pad, 2 * n_items), jnp.float32),
        in_specs=[vmem, vmem, vmem],
        out_specs=vmem,
        scratch_shapes=[pltpu.VMEM((rows_pad, n_items), jnp.float32)],
    )(problem_tag, x, slab)

    # lane/row slicing done wrapper-side (the kernel outputs only full tiles)
    mu = fused_out[:rows, :LATENT]
    logvar = fused_out[:rows, LATENT:2 * LATENT]
    recon = fused_out[n_tag:rows, n_items:]
    return recon, mu, logvar


# ---- init & reference --------------------------------------------------------
def _init_params(key):
    """Deterministic init mirroring MultiVAE.init_weights (xavier-ish normal)."""
    def linear(key, d_in, d_out):
        kw, kb = jax.random.split(key)
        std = jnp.sqrt(2.0 / (d_in + d_out))
        w = std * jax.random.normal(kw, (d_out, d_in), jnp.float32)   # torch (out, in)
        b = 0.001 * jax.random.normal(kb, (d_out,), jnp.float32)
        return w, b

    k1, k2, k3, k4 = jax.random.split(key, 4)
    params = {}
    # q layers: temp_q_dims pairs = (128 -> 64), (64 -> 64)
    params["q_w1"], params["q_b1"] = linear(k1, TEMP_Q_DIMS[0], TEMP_Q_DIMS[1])
    params["q_w2"], params["q_b2"] = linear(k2, TEMP_Q_DIMS[1], TEMP_Q_DIMS[2])
    # p layers: p_dims pairs = (32 -> 64), (64 -> 128)
    params["p_w1"], params["p_b1"] = linear(k3, P_DIMS[0], P_DIMS[1])
    params["p_w2"], params["p_b2"] = linear(k4, P_DIMS[1], P_DIMS[2])
    return params


def _reference_forward(x, problem_tag, params):
    """Pure-JAX reference (same torch math, eval mode) for correctness checking."""
    norm = jnp.sqrt(jnp.sum(x * x, axis=1, keepdims=True))
    h = x / jnp.maximum(norm, EPS)
    h = jnp.concatenate([problem_tag, h], axis=0)
    h = jnp.tanh(h @ params["q_w1"].T + params["q_b1"])
    h2 = h @ params["q_w2"].T + params["q_b2"]
    mu, logvar = h2[:, :LATENT], h2[:, LATENT:]
    z = mu
    d = jnp.tanh(z @ params["p_w1"].T + params["p_b1"])
    out = d @ params["p_w2"].T + params["p_b2"]
    recon = out[problem_tag.shape[0]:, :]
    return recon, mu, logvar


if __name__ == "__main__":
    key = jax.random.PRNGKey(0)
    k_params, k_x, k_tag = jax.random.split(key, 3)

    params = _init_params(k_params)
    slab = pack_params(params)     # one-time packing, hoisted out of the forward path

    # user-item interaction rows (non-negative counts, like implicit feedback)
    x = jax.random.uniform(k_x, (B, N_ITEMS), jnp.float32)
    x = jnp.where(x > 0.7, 1.0, 0.0)
    problem_tag = jax.random.normal(k_tag, (T, N_ITEMS), jnp.float32)

    recon, mu, logvar = multivae_forward(x, problem_tag, slab)
    jax.block_until_ready((recon, mu, logvar))

    # correctness check against the pure-JAX reference (unfused, torch math)
    r_recon, r_mu, r_logvar = _reference_forward(x, problem_tag, params)
    assert recon.shape == (B, N_ITEMS)
    assert mu.shape == (T + B, LATENT) and logvar.shape == (T + B, LATENT)
    assert jnp.allclose(recon, r_recon, atol=1e-4, rtol=1e-4)
    assert jnp.allclose(mu, r_mu, atol=1e-4, rtol=1e-4)
    assert jnp.allclose(logvar, r_logvar, atol=1e-4, rtol=1e-4)

    print("KERNEL_OK")
</pallas_src>

<mosaic_0001>
module attributes {stable_mosaic.version = 11 : i64} {
  func.func @_multivae_kernel(%arg0: memref<4x128xf32, #tpu.memory_space<vmem>>, %arg1: memref<2x128xf32, #tpu.memory_space<vmem>>, %arg2: memref<392x128xf32, #tpu.memory_space<vmem>>, %arg3: memref<8x256xf32, #tpu.memory_space<vmem>>, %arg4: memref<8x128xf32, #tpu.memory_space<vmem>>) attributes {dimension_semantics = [], scalar_prefetch = 0 : i64, scratch_operands = 1 : i64, tpu.core_type = #tpu.core_type<tc>} {
    %cst = arith.constant 0.000000e+00 : f32
    %0 = vector.broadcast %cst : f32 to vector<8x128xf32>
    %c0 = arith.constant 0 : index
    %c0_0 = arith.constant 0 : index
    %1 = vector.load %arg4[%c0, %c0_0] : memref<8x128xf32, #tpu.memory_space<vmem>>, vector<8x128xf32>
    tpu.vector_store %arg4[%c0, %c0_0], %0 {strides = array<i32>} : memref<8x128xf32, #tpu.memory_space<vmem>>, vector<8x128xf32>,
    %c0_1 = arith.constant 0 : index
    %c0_2 = arith.constant 0 : index
    %2 = vector.load %arg0[%c0_1, %c0_2] : memref<4x128xf32, #tpu.memory_space<vmem>>, vector<4x128xf32>
    %c0_3 = arith.constant 0 : index
    %c0_4 = arith.constant 0 : index
    %3 = vector.load %arg4[%c0_3, %c0_4] : memref<8x128xf32, #tpu.memory_space<vmem>>, vector<4x128xf32>
    tpu.vector_store %arg4[%c0_3, %c0_4], %2 {strides = array<i32>} : memref<8x128xf32, #tpu.memory_space<vmem>>, vector<4x128xf32>,
    %c0_5 = arith.constant 0 : index
    %c0_6 = arith.constant 0 : index
    %4 = vector.load %arg1[%c0_5, %c0_6] : memref<2x128xf32, #tpu.memory_space<vmem>>, vector<2x128xf32>
    %5 = arith.mulf %4, %4 : vector<2x128xf32>
    %cst_7 = arith.constant dense<0.000000e+00> : vector<2xf32>
    %6 = vector.multi_reduction <add>, %5, %cst_7 [1] : vector<2x128xf32> to vector<2xf32>
    %7 = vector.shape_cast %6 : vector<2xf32> to vector<2x1xf32>
    %cst_8 = arith.constant 1.000000e-24 : f32
    %8 = vector.broadcast %cst_8 : f32 to vector<2x1xf32>
    %9 = arith.maximumf %7, %8 : vector<2x1xf32>
    %10 = math.rsqrt %9 : vector<2x1xf32>
    %11 = vector.broadcast %10 : vector<2x1xf32> to vector<2x128xf32>
    %12 = arith.mulf %4, %11 : vector<2x128xf32>
    %c4 = arith.constant 4 : index
    %c0_9 = arith.constant 0 : index
    %13 = vector.load %arg4[%c4, %c0_9] : memref<8x128xf32, #tpu.memory_space<vmem>>, vector<2x128xf32>
    tpu.vector_store %arg4[%c4, %c0_9], %12 {strides = array<i32>} : memref<8x128xf32, #tpu.memory_space<vmem>>, vector<2x128xf32>,
    %c0_10 = arith.constant 0 : index
    %c0_11 = arith.constant 0 : index
    %14 = vector.load %arg4[%c0_10, %c0_11] : memref<8x128xf32, #tpu.memory_space<vmem>>, vector<8x128xf32>
    %c0_12 = arith.constant 0 : index
    %c0_13 = arith.constant 0 : index
    %15 = vector.load %arg2[%c0_12, %c0_13] : memref<392x128xf32, #tpu.memory_space<vmem>>, vector<128x128xf32>
    %c128 = arith.constant 128 : index
    %c0_14 = arith.constant 0 : index
    %16 = vector.load %arg2[%c128, %c0_14] : memref<392x128xf32, #tpu.memory_space<vmem>>, vector<128x128xf32>
    %c256 = arith.constant 256 : index
    %c0_15 = arith.constant 0 : index
    %17 = vector.load %arg2[%c256, %c0_15] : memref<392x128xf32, #tpu.memory_space<vmem>>, vector<128x128xf32>
    %c384 = arith.constant 384 : index
    %c0_16 = arith.constant 0 : index
    %18 = vector.load %arg2[%c384, %c0_16] : memref<392x128xf32, #tpu.memory_space<vmem>>, vector<1x128xf32>
    %c385 = arith.constant 385 : index
    %c0_17 = arith.constant 0 : index
    %19 = vector.load %arg2[%c385, %c0_17] : memref<392x128xf32, #tpu.memory_space<vmem>>, vector<1x128xf32>
    %c386 = arith.constant 386 : index
    %c0_18 = arith.constant 0 : index
    %20 = vector.load %arg2[%c386, %c0_18] : memref<392x128xf32, #tpu.memory_space<vmem>>, vector<1x128xf32>
    %cst_19 = arith.constant dense<0.000000e+00> : vector<8x128xf32>
    %21 = tpu.matmul %14, %15, %cst_19 {dimension_numbers = #tpu.dot_dimension_numbers<[1], [0], [0], [1], [0, 0, 1, 1], [], []>} : vector<8x128xf32>, vector<128x128xf32>, vector<8x128xf32> -> vector<8x128xf32>
    %22 = vector.broadcast %18 : vector<1x128xf32> to vector<8x128xf32>
    %23 = arith.addf %21, %22 : vector<8x128xf32>
    %24 = math.tanh %23 : vector<8x128xf32>
    %cst_20 = arith.constant dense<0.000000e+00> : vector<8x128xf32>
    %25 = tpu.matmul %24, %16, %cst_20 {dimension_numbers = #tpu.dot_dimension_numbers<[1], [0], [0], [1], [0, 0, 1, 1], [], []>} : vector<8x128xf32>, vector<128x128xf32>, vector<8x128xf32> -> vector<8x128xf32>
    %26 = vector.broadcast %19 : vector<1x128xf32> to vector<8x128xf32>
    %27 = arith.addf %25, %26 : vector<8x128xf32>
    %c0_21 = arith.constant 0 : index
    %c0_22 = arith.constant 0 : index
    %28 = vector.load %arg3[%c0_21, %c0_22] : memref<8x256xf32, #tpu.memory_space<vmem>>, vector<8x128xf32>
    tpu.vector_store %arg3[%c0_21, %c0_22], %27 {strides = array<i32>} : memref<8x256xf32, #tpu.memory_space<vmem>>, vector<8x128xf32>,
    %29 = math.tanh %27 : vector<8x128xf32>
    %cst_23 = arith.constant dense<0.000000e+00> : vector<8x128xf32>
    %30 = tpu.matmul %29, %17, %cst_23 {dimension_numbers = #tpu.dot_dimension_numbers<[1], [0], [0], [1], [0, 0, 1, 1], [], []>} : vector<8x128xf32>, vector<128x128xf32>, vector<8x128xf32> -> vector<8x128xf32>
    %31 = vector.broadcast %20 : vector<1x128xf32> to vector<8x128xf32>
    %32 = arith.addf %30, %31 : vector<8x128xf32>
    %c0_24 = arith.constant 0 : index
    %c128_25 = arith.constant 128 : index
    %33 = vector.load %arg3[%c0_24, %c128_25] : memref<8x256xf32, #tpu.memory_space<vmem>>, vector<8x128xf32>
    tpu.vector_store %arg3[%c0_24, %c128_25], %32 {strides = array<i32>} : memref<8x256xf32, #tpu.memory_space<vmem>>, vector<8x128xf32>,
    return
  }
}

</mosaic_0001>

<bundles_post_ra>
// kernel: multivae_forward.1
= control target key start
LH: loop header
LB: loop body
LE: loop exit
PB: predicated region body
PF: predicated region fallthrough
CT: control target
= control target key end

     0   :  { %8 = vsyncpa [#allocation4], 0  ;;  %s728_s0 = inlined_call_operand.vmem [shape: f32[4,128], index: 0, kind: input, shape index: {}]   ;;  %s729_s1 = inlined_call_operand.hbm [shape: f32[2,128], index: 1, kind: input, shape index: {}]   ;;  %s730_s2 = inlined_call_operand.hbm [shape: f32[392,128], index: 2, kind: input, shape index: {}]   ;;  %s731_s3 = inlined_call_operand.vmem [shape: f32[8,256], index: 3, kind: output, shape index: {}]  }
   0x1   :  { %9 = vsyncpa [#allocation6], 0  ;;  %s629_s12 = smov [#allocation3]   ;;  %s630_s14 = smov [#allocation5]  }
   0x2   :  { %s18_s13 = sshll.u32 %s629_s12, 4  ;;  %s27_s15 = sshll.u32 %s630_s14, 4  ;;  %s19_s13 = int_to_ptr.vmem [resolvable:$true] %s18_s13  ;;  %s656_s15 = int_to_ptr.vmem [resolvable:$true] %s27_s15 }
   0x3   :  { %s581_s18 = scalar_lea.hbm %s729_s1, 32 }
   0x4   :  { %p582_p0 = scmp.ne.s32.totalorder %s729_s1, %s581_s18  ;;  %p585_p1 = scmp.lt.u32.totalorder %s581_s18, %s729_s1 }
   0x6   :  { %p587_p2 = pnand %p585_p1, %p582_p0 }
   0x8   :  { %590 = shalt.err (!%p587_p2)
}
   0x9   :  { %s591_s23 = scalar_lea.vmem %s19_s13, 32  ;;  %p596_p4 = scmp.lt.s32.totalorder %s19_s13, %s19_s13 }
   0xa   :  { %p592_p3 = scmp.ne.s32.totalorder %s19_s13, %s591_s23  ;;  %p597_p5 = scmp.lt.s32.totalorder %s591_s23, %s591_s23 }
   0xc   :  { %p598_p6 = por %p597_p5, %p596_p4 }
   0xe   :  { %p599_p7 = pnand %p598_p6, %p592_p3 }
  0x10   :  { %602 = shalt.err (!%p599_p7)
}
  0x11   :  { %21 = dma.hbm_to_vmem [thread:$0]  %s729_s1, 32, %s19_s13, [#allocation4]  }
  0x12   :  { %s603_s28 = scalar_lea.hbm %s730_s2, 6272 }
  0x13   :  { %p604_p8 = scmp.ne.s32.totalorder %s730_s2, %s603_s28  ;;  %p607_p9 = scmp.lt.u32.totalorder %s603_s28, %s730_s2 }
  0x15   :  { %p609_p10 = pnand %p607_p9, %p604_p8 }
  0x17   :  { %612 = shalt.err (!%p609_p10)
}
  0x18   :  { %s613_s6 = scalar_lea.vmem %s656_s15, 6272  ;;  %p618_p12 = scmp.lt.s32.totalorder %s656_s15, %s656_s15 }
  0x19   :  { %p614_p11 = scmp.ne.s32.totalorder %s656_s15, %s613_s6  ;;  %p619_p13 = scmp.lt.s32.totalorder %s613_s6, %s613_s6 }
  0x1b   :  { %p620_p0 = por %p619_p13, %p618_p12 }
  0x1d   :  { %p621_p1 = pnand %p620_p0, %p614_p11 }
  0x1f   :  { %624 = shalt.err (!%p621_p1)
}
  0x20   :  { %s631_s1 = smov 128   ;;  %s632_s7 = smov 8  }
  0x21   :  { %33 = dma.hbm_to_vmem [thread:$0]  %s730_s2, 6272, %s656_s15, [#allocation6], %s631_s1, %s631_s1, %s632_s7  }
  0x22   :  { %625 = dma.done.wait [#allocation4], 32  }
  0x23   :  { %626 = vsyncadd [#allocation4], 4294967264 }
  0x24   :  { %627 = dma.done.wait [#allocation6], 6272  }
  0x25   :  { %628 = vsyncadd [#allocation6], 4294961024  ;;  %v633_v0 = vmov 0.0|0.0   ;;  %v689_v1 = vld [vmem:[#allocation3] sm:$0x3]  ;;  %vm45_vm0 = vcmask 1041408  }
  0x26   :  { %496 = vmatprep.subr.bf16.mxu0 %v633_v0  ;;  %520 = vmatprep.subr.bf16.mxu1 %v633_v0  ;;  %v54_v2 = vld [vmem:[#allocation5] sm:$0xff]  ;;  %v55_v3 = vld [vmem:[#allocation5 + $0x8] sm:$0xff]  ;;  %v44_v4 = vmul.f32 %v689_v1, %v689_v1  ;;  %v56_v6 = vld [vmem:[#allocation5 + $0x10] sm:$0xff]  ;;  %v634_v27 = vmov 0.0   ;;  %vm635_vm1 = vmmov 0  }
  0x27   :  { %v497_v5 = vpack.c.bf16 %v55_v3, %v54_v2  ;;  %v57_v7 = vld [vmem:[#allocation5 + $0x18] sm:$0xff]  ;;  %v58_v10 = vld [vmem:[#allocation5 + $0x20] sm:$0xff]  ;;  %v59_v11 = vld [vmem:[#allocation5 + $0x28] sm:$0xff]  ;;  %40 = vst [vmem:[#allocation2] sm:$0xff] %v634_v27  ;;  %423 = vmatprep.mubr.msk.f32.mxu0 %vm635_vm1, %v634_v27  ;;  %458 = vmatprep.mubr.msk.f32.mxu1 %vm635_vm1, %v634_v27 }
  0x28   :  { %v46_v8 = vsel %vm45_vm0, %v44_v4, 0.0  ;;  %v500_v9 = vpack.c.bf16 %v57_v7, %v56_v6  ;;  %v503_v12 = vpack.c.bf16 %v59_v11, %v58_v10  ;;  %v60_v13 = vld [vmem:[#allocation5 + $0x30] sm:$0xff]  ;;  %v61_v14 = vld [vmem:[#allocation5 + $0x38] sm:$0xff]  ;;  %v62_v16 = vld [vmem:[#allocation5 + $0x40] sm:$0xff] }
  0x29   :  { %498 = vmatpush3.bf16.msra.mxu0 %v497_v5  ;;  %47 = vadd.xlane.f32.xlu0 %v46_v8  ;;  %v506_v15 = vpack.c.bf16 %v61_v14, %v60_v13  ;;  %v63_v17 = vld [vmem:[#allocation5 + $0x48] sm:$0xff]  ;;  %v64_v19 = vld [vmem:[#allocation5 + $0x50] sm:$0xff]  ;;  %v65_v20 = vld [vmem:[#allocation5 + $0x58] sm:$0xff] }
  0x2a   :  { %499 = vmatprep.subr.bf16.mxu0 %v633_v0  ;;  %v509_v18 = vpack.c.bf16 %v63_v17, %v62_v16  ;;  %v512_v21 = vpack.c.bf16 %v65_v20, %v64_v19  ;;  %v66_v22 = vld [vmem:[#allocation5 + $0x60] sm:$0xff]  ;;  %v67_v23 = vld [vmem:[#allocation5 + $0x68] sm:$0xff]  ;;  %v68_v24 = vld [vmem:[#allocation5 + $0x70] sm:$0xff] }
  0x2b   :  { %v515_v25 = vpack.c.bf16 %v67_v23, %v66_v22  ;;  %v69_v26 = vld [vmem:[#allocation5 + $0x78] sm:$0xff]  ;;  %v41_v28 = vld [vmem:[%s728_s0] sm:$0xf]  ;;  %v72_v32 = vld [vmem:[#allocation5 + $0x90] sm:$0xff] }
  0x2c   :  { %42 = vst [vmem:[#allocation2] sm:$0xf] %v41_v28  ;;  %v518_v29 = vpack.c.bf16 %v69_v26, %v68_v24  ;;  %v70_v30 = vld [vmem:[#allocation5 + $0x80] sm:$0xff]  ;;  %v71_v31 = vld [vmem:[#allocation5 + $0x88] sm:$0xff]  ;;  %v73_v34 = vld [vmem:[#allocation5 + $0x98] sm:$0xff] }
  0x2d   :  { %501 = vmatpush3.bf16.msra.mxu0 %v500_v9  ;;  %v521_v33 = vpack.c.bf16 %v71_v31, %v70_v30  ;;  %v524_v35 = vpack.c.bf16 %v73_v34, %v72_v32  ;;  %v74_v36 = vld [vmem:[#allocation5 + $0xa0] sm:$0xff]  ;;  %v75_v37 = vld [vmem:[#allocation5 + $0xa8] sm:$0xff]  ;;  %v76_v39 = vld [vmem:[#allocation5 + $0xb0] sm:$0xff] }
  0x2e   :  { %502 = vmatprep.subr.bf16.mxu0 %v633_v0  ;;  %v527_v38 = vpack.c.bf16 %v75_v37, %v74_v36  ;;  %v77_v40 = vld [vmem:[#allocation5 + $0xb8] sm:$0xff]  ;;  %v78_v42 = vld [vmem:[#allocation5 + $0xc0] sm:$0xff]  ;;  %v79_v43 = vld [vmem:[#allocation5 + $0xc8] sm:$0xff] }
  0x2f   :  { %522 = vmatpush3.bf16.msra.mxu1 %v521_v33  ;;  %v530_v41 = vpack.c.bf16 %v77_v40, %v76_v39  ;;  %v533_v44 = vpack.c.bf16 %v79_v43, %v78_v42  ;;  %v80_v50 = vld [vmem:[#allocation5 + $0xd0] sm:$0xff]  ;;  %v81_v51 = vld [vmem:[#allocation5 + $0xd8] sm:$0xff]  ;;  %v82_v53 = vld [vmem:[#allocation5 + $0xe0] sm:$0xff] }
  0x30   :  { %523 = vmatprep.subr.bf16.mxu1 %v633_v0  ;;  %v536_v52 = vpack.c.bf16 %v81_v51, %v80_v50  ;;  %v83_v54 = vld [vmem:[#allocation5 + $0xe8] sm:$0xff]  ;;  %v84_v56 = vld [vmem:[#allocation5 + $0xf0] sm:$0xff]  ;;  %v85_v57 = vld [vmem:[#allocation5 + $0xf8] sm:$0xff] }
  0x31   :  { %504 = vmatpush3.bf16.msra.mxu0 %v503_v12  ;;  %v539_v55 = vpack.c.bf16 %v83_v54, %v82_v53  ;;  %v542_v58 = vpack.c.bf16 %v85_v57, %v84_v56  ;;  %v86_v59 = vld [vmem:[#allocation5 + $0x100] sm:$0xff]  ;;  %v87_v60 = vld [vmem:[#allocation5 + $0x108] sm:$0xff]  ;;  %v88_v61 = vld [vmem:[#allocation5 + $0x110] sm:$0xff] }
  0x32   :  { %505 = vmatprep.subr.bf16.mxu0 %v633_v0  ;;  %v545_v62 = vpack.c.bf16 %v87_v60, %v86_v59  ;;  %v89_v63 = vld [vmem:[#allocation5 + $0x118] sm:$0xff]  ;;  %v90_v2 = vld [vmem:[#allocation5 + $0x120] sm:$0xff]  ;;  %v91_v3 = vld [vmem:[#allocation5 + $0x128] sm:$0xff] }
  0x33   :  { %525 = vmatpush3.bf16.msra.mxu1 %v524_v35  ;;  %v551_v4 = vpack.c.bf16 %v91_v3, %v90_v2  ;;  %v92_v5 = vld [vmem:[#allocation5 + $0x130] sm:$0xff]  ;;  %v93_v6 = vld [vmem:[#allocation5 + $0x138] sm:$0xff]  ;;  %v94_v8 = vld [vmem:[#allocation5 + $0x140] sm:$0xff] }
  0x34   :  { %526 = vmatprep.subr.bf16.mxu1 %v633_v0  ;;  %v554_v7 = vpack.c.bf16 %v93_v6, %v92_v5  ;;  %v95_v9 = vld [vmem:[#allocation5 + $0x148] sm:$0xff]  ;;  %v337_v11 = vld [vmem:[#allocation5 + $0x180] ss:$0 sm:$0xff]  ;;  %v96_v16 = vld [vmem:[#allocation5 + $0x150] sm:$0xff] }
  0x35   :  { %507 = vmatpush3.bf16.msra.mxu0 %v506_v15  ;;  %v557_v10 = vpack.c.bf16 %v95_v9, %v94_v8  ;;  %v97_v17 = vld [vmem:[#allocation5 + $0x158] sm:$0xff]  ;;  %v98_v19 = vld [vmem:[#allocation5 + $0x160] sm:$0xff]  ;;  %v99_v20 = vld [vmem:[#allocation5 + $0x168] sm:$0xff] }
  0x36   :  { %508 = vmatprep.subr.bf16.mxu0 %v633_v0  ;;  %v100_v22 = vld [vmem:[#allocation5 + $0x170] sm:$0xff]  ;;  %v101_v23 = vld [vmem:[#allocation5 + $0x178] sm:$0xff]  ;;  %v339_v30 = vld [vmem:[#allocation5 + $0x182] ss:$0 sm:$0xff] }
  0x37   :  { %528 = vmatpush3.bf16.msra.mxu1 %v527_v38  ;;  %v566_v24 = vpack.c.bf16 %v101_v23, %v100_v22 }
  0x38   :  { %529 = vmatprep.subr.bf16.mxu1 %v633_v0 }
  0x39   :  { %510 = vmatpush3.bf16.msra.mxu0 %v509_v18  ;;  %v560_v18 = vpack.c.bf16 %v97_v17, %v96_v16 }
  0x3a   :  { %511 = vmatprep.subr.bf16.mxu0 %v633_v0 }
  0x3b   :  { %531 = vmatpush3.bf16.msra.mxu1 %v530_v41 }
  0x3c   :  { %532 = vmatprep.subr.bf16.mxu1 %v633_v0 }
  0x3d   :  { %513 = vmatpush3.bf16.msra.mxu0 %v512_v21  ;;  %v563_v21 = vpack.c.bf16 %v99_v20, %v98_v19 }
  0x3e   :  { %514 = vmatprep.subr.bf16.mxu0 %v633_v0 }
  0x3f   :  { %534 = vmatpush3.bf16.msra.mxu1 %v533_v44 }
  0x40   :  { %535 = vmatprep.subr.bf16.mxu1 %v633_v0 }
  0x41   :  { %516 = vmatpush3.bf16.msra.mxu0 %v515_v25  ;;  %v338_v25 = vld [vmem:[#allocation5 + $0x181] ss:$0 sm:$0xff] }
  0x42   :  { %517 = vmatprep.subr.bf16.mxu0 %v633_v0 }
  0x43   :  { %537 = vmatpush3.bf16.msra.mxu1 %v536_v52 }
  0x44   :  { %538 = vmatprep.subr.bf16.mxu1 %v633_v0 }
  0x45   :  { %519 = vmatpush3.bf16.msra.mxu0 %v518_v29 }
  0x46   :  { %544 = vmatprep.subr.bf16.mxu0 %v633_v0 }
  0x47   :  { %540 = vmatpush3.bf16.msra.mxu1 %v539_v55 }
  0x48   :  { %541 = vmatprep.subr.bf16.mxu1 %v633_v0 }
  0x4b   :  { %543 = vmatpush3.bf16.msra.mxu1 %v542_v58 }
  0xb6   :  { %v48_v45 = vpop.xlane.xlu0 %47 }
  0xb7   :  { %v49_v46 = vmax.f32 %v48_v45, 1e-24 }
  0xb9   :  { %575 = vrsqrt.f32 %v49_v46 }
  0xc3   :  { %v576_v47 = vpop.eup %575 }
  0xc4   :  { %v51_v48 = vmul.f32 %v576_v47, %v689_v1  ;;  %v548_v1 = vpack.c.bf16 %v89_v63, %v88_v61 }
  0xc6   :  { %52 = vst [vmem:[#allocation2 + $0x4] sm:$0x3] %v51_v48 }
  0xcd   :  { %v53_v49 = vld [vmem:[#allocation2] sm:$0xff] }
  0xce   :  { %424 = vmatmul.mubr.f32.vlgmr.msra.gmra.mrb[0].mxu0 %v53_v49 }
  0xcf   :  { %493 = vmatprep.mubr.msk.f32.mxu0 %vm635_vm1, %v634_v27  ;;  %546 = vmatpush3.bf16.msra.mxu0 %v545_v62 }
  0xd0   :  { %547 = vmatprep.subr.bf16.mxu0 %v633_v0 }
  0xd3   :  { %549 = vmatpush3.bf16.msra.mxu0 %v548_v1 }
  0xd4   :  { %550 = vmatprep.subr.bf16.mxu0 %v633_v0 }
  0xd7   :  { %552 = vmatpush3.bf16.msra.mxu0 %v551_v4 }
  0xd8   :  { %553 = vmatprep.subr.bf16.mxu0 %v633_v0 }
  0xdb   :  { %555 = vmatpush3.bf16.msra.mxu0 %v554_v7 }
  0xdc   :  { %556 = vmatprep.subr.bf16.mxu0 %v633_v0 }
  0xdf   :  { %558 = vmatpush3.bf16.msra.mxu0 %v557_v10 }
  0xe0   :  { %559 = vmatprep.subr.bf16.mxu0 %v633_v0 }
  0xe3   :  { %561 = vmatpush3.bf16.msra.mxu0 %v560_v18 }
  0xe4   :  { %562 = vmatprep.subr.bf16.mxu0 %v633_v0 }
  0xe7   :  { %564 = vmatpush3.bf16.msra.mxu0 %v563_v21 }
  0xe8   :  { %565 = vmatprep.subr.bf16.mxu0 %v633_v0 }
  0xeb   :  { %567 = vmatpush3.bf16.msra.mxu0 %v566_v24 }
 0x1a1   :  { %v175_v12 = vpop.f32.mrb[0].mxu0 }
 0x1a2   :  { %v176_v13 = vadd.f32 %v337_v11, %v175_v12  ;;  %v425_v14 = vpop.f32.mrb[1].mxu0 }
 0x1a4   :  { %577 = vtanh.f32 %v176_v13 }
 0x1ae   :  { %v578_v15 = vpop.eup %577 }
 0x1af   :  { %459 = vmatmul.mubr.f32.vlgmr.msra.gmra.mrb[0].mxu1 %v578_v15 }
 0x282   :  { %v250_v26 = vpop.f32.mrb[0].mxu1 }
 0x283   :  { %v251_v27 = vadd.f32 %v338_v25, %v250_v26  ;;  %v460_v28 = vpop.f32.mrb[1].mxu1 }
 0x285   :  { %254 = vst [vmem:[%s731_s3] sm:$0xff] %v251_v27  ;;  %579 = vtanh.f32 %v251_v27 }
 0x28f   :  { %v580_v29 = vpop.eup %579 }
 0x290   :  { %494 = vmatmul.mubr.f32.vlgmr.msra.gmra.mrb[2].mxu0 %v580_v29 }
 0x363   :  { %v326_v31 = vpop.f32.mrb[2].mxu0 }
 0x364   :  { %v327_v32 = vadd.f32 %v339_v30, %v326_v31  ;;  %v495_v33 = vpop.f32.mrb[3].mxu0 }
 0x366   :  { %330 = vst [vmem:[%s731_s3 + $0x8] sm:$0xff] %v327_v32 }
 0x367   :  { %335 = vsyncpa [#allocation4], 1 }
 0x368   :  { %336 = vsyncpa [#allocation6], 1 }

</bundles_post_ra>
